<compile_context>
chip_gen: v6e
topology: v6e:2x2x1
jax: 0.10.0
libtpu: 0.0.40
codegen_flags: <defaults>
</compile_context>

<pallas_src>
import jax
import jax.numpy as jnp
from jax.experimental import pallas as pl
from jax.experimental.pallas import tpu as pltpu


def _round_up(x, m):
    return ((x + m - 1) // m) * m


def cnn_kernel(x_ref, w_ref, b_ref, o_ref):
    # x_ref: (L, B_TILE, E)   bf16  raw input block, time-major (no HBM im2col)
    # w_ref: (K, E, F_pad)    bf16  conv weights, resident in VMEM
    # b_ref: (1, F_pad)       f32   conv bias, resident in VMEM
    # o_ref: (B_TILE, F_pad)  f32   max-over-time pooled features
    L, BT, E = x_ref.shape
    K = w_ref.shape[0]
    FP = o_ref.shape[-1]
    L_out = L - K + 1

    # conv[t, b, f] = sum_k  x[t + k, b, :] @ w[k, :, f]
    # K is a small static Python int -> loop fully unrolled at trace time.
    # Slices are on the leading (untiled) axis -> free; BT % 16 == 0 makes the
    # (L_out, BT, E) -> (L_out*BT, E) merge sublane-tile aligned (layout-free).
    acc = jnp.zeros((L_out * BT, FP), dtype=jnp.float32)
    for k in range(K):
        x_k = x_ref[pl.ds(k, L_out), :, :].reshape(L_out * BT, E)
        acc = acc + jnp.dot(x_k, w_ref[k], preferred_element_type=jnp.float32)

    # Max-pool over time FIRST, then bias + ReLU (hoisted past the max: both are
    # monotone, so relu(max_t c_t + b) == max_t relu(c_t + b)).
    pooled = jnp.max(acc.reshape(L_out, BT, FP), axis=0)      # (BT, FP)
    o_ref[...] = jnp.maximum(pooled + b_ref[...], 0.0)


def cnn_forward(x_ncl, weight, bias, kernel_size, max_word_length):
    """x_ncl: (B, E, L) like PyTorch; weight: (F, E, K); bias: (F,)."""
    B, E, L = x_ncl.shape
    F_out = weight.shape[0]
    K = kernel_size
    assert L == max_word_length
    L_out = L - K + 1
    assert L_out >= 1

    F_pad = _round_up(F_out, 128)           # lane-dense output -> unmasked vst

    # Batch tile: multiple of 16 (bf16 sublane tile => layout-free merges), as big
    # as practical, but target >= 2 grid steps when the batch allows so both v7x
    # TensorCores get work under dimension_semantics=("parallel",).
    B16 = _round_up(B, 16)
    if B16 <= 16:
        B_TILE = B16
    else:
        B_TILE = min(512, _round_up(pl.cdiv(B16, 2), 16))
    B_pad = _round_up(B, B_TILE)
    grid = (B_pad // B_TILE,)

    # ---- wrapper-side layout glue only (no im2col, no K-fold duplication) -----
    # (B, E, L) -> (L, B, E): time on the leading (untiled) axis so the kernel's
    # K shifted windows are free slices; zero-pad the batch (rows sliced off
    # later), cast to bf16 for DMA/MXU.
    x_lbe = jnp.transpose(x_ncl, (2, 0, 1))
    x_lbe = jnp.pad(x_lbe, ((0, 0), (0, B_pad - B), (0, 0))).astype(jnp.bfloat16)

    # Weights: (F, E, K) -> (K, E, F_pad), zero-padded filters, bf16, resident.
    w_kef = jnp.transpose(weight, (2, 1, 0))
    w_kef = jnp.pad(w_kef, ((0, 0), (0, 0), (0, F_pad - F_out))).astype(jnp.bfloat16)

    # Bias stays f32 (added to the f32 pooled value after the max).
    b2 = jnp.pad(bias, (0, F_pad - F_out)).reshape(1, F_pad).astype(jnp.float32)

    # VMEM budget: 2x double-buffered input + output blocks, the f32 accumulator,
    # resident weights/bias, plus headroom. Floor at the 16 MiB scoped default
    # (safe on v5e), cap at 48 MiB (fits v7x's 64 MiB physical VMEM).
    in_block_b = L * B_TILE * max(E, 128) * 2          # E lanes pad to 128 in VMEM
    out_block_b = B_TILE * F_pad * 4
    acc_b = L_out * B_TILE * F_pad * 4
    w_b = K * _round_up(E, 16) * F_pad * 2 + 8 * F_pad * 4
    vmem_est = 2 * in_block_b + 2 * out_block_b + acc_b + w_b
    vmem_limit = min(max(int(vmem_est * 1.5), 16 * 1024 * 1024), 48 * 1024 * 1024)

    flops = 2 * B_pad * L_out * K * E * F_pad
    bytes_accessed = (x_lbe.size * 2 + w_kef.size * 2 + b2.size * 4
                      + B_pad * F_pad * 4)

    out = pl.pallas_call(
        cnn_kernel,
        out_shape=jax.ShapeDtypeStruct((B_pad, F_pad), jnp.float32),
        grid=grid,
        in_specs=[
            pl.BlockSpec((L, B_TILE, E), lambda i: (0, i, 0)),
            pl.BlockSpec((K, E, F_pad), lambda i: (0, 0, 0)),   # resident weights
            pl.BlockSpec((1, F_pad), lambda i: (0, 0)),         # resident bias
        ],
        out_specs=pl.BlockSpec((B_TILE, F_pad), lambda i: (i, 0)),
        compiler_params=pltpu.CompilerParams(
            dimension_semantics=("parallel",),
            vmem_limit_bytes=vmem_limit,
        ),
        cost_estimate=pl.CostEstimate(
            flops=flops, transcendentals=0, bytes_accessed=bytes_accessed),
    )(x_lbe, w_kef, b2)

    # torch .squeeze() removes the size-1 pooled-length dim -> (B, F);
    # slice away the batch / filter padding.
    return out[:B, :F_out]


def reference_forward(x_ncl, weight, bias, kernel_size):
    """Plain-JAX f32 reference matching PyTorch Conv1d + relu_ + max_pool1d."""
    B, E, L = x_ncl.shape
    F_out, _, K = weight.shape
    L_out = L - K + 1
    cols = jnp.stack([x_ncl[:, :, k:k + L_out] for k in range(K)], axis=-1)  # (B,E,L_out,K)
    conv = jnp.einsum("belk,fek->bfl", cols, weight) + bias[None, :, None]   # (B,F,L_out)
    return jnp.max(jnp.maximum(conv, 0.0), axis=-1)                          # (B,F)


if __name__ == "__main__":
    # Small shapes consistent with the module's forward.
    batch = 2
    char_embed_size = 4
    max_word_length = 16
    filters = 32
    kernel_size = 5

    key = jax.random.PRNGKey(0)
    kx, kw, kb = jax.random.split(key, 3)

    x = jax.random.normal(kx, (batch, char_embed_size, max_word_length), jnp.float32)
    # Deterministic synthetic Conv1d parameters (shape matches nn.Conv1d).
    weight = jax.random.normal(kw, (filters, char_embed_size, kernel_size), jnp.float32) * 0.1
    bias = jax.random.normal(kb, (filters,), jnp.float32) * 0.1

    out = cnn_forward(x, weight, bias, kernel_size, max_word_length)
    out = jax.block_until_ready(out)

    ref = reference_forward(x, weight, bias, kernel_size)
    assert out.shape == (batch, filters), out.shape
    # bf16 matmul inputs -> relaxed tolerance vs the f32 reference.
    assert jnp.allclose(out, ref, atol=2e-2, rtol=2e-2), "mismatch vs reference"

    print("KERNEL_OK")
</pallas_src>

<mosaic_0001>
module attributes {stable_mosaic.version = 11 : i64} {
  func.func @cnn_kernel(%arg0: i32, %arg1: memref<16x16x4xbf16, #tpu.memory_space<vmem>>, %arg2: memref<5x4x128xbf16, #tpu.memory_space<vmem>>, %arg3: memref<1x128xf32, #tpu.memory_space<vmem>>, %arg4: memref<16x128xf32, #tpu.memory_space<vmem>>) attributes {dimension_semantics = [#tpu.dimension_semantics<parallel>], iteration_bounds = array<i64: 1>, scalar_prefetch = 0 : i64, scratch_operands = 0 : i64, tpu.core_type = #tpu.core_type<tc>, window_params = [{transform_indices = @transform_0, window_bounds = array<i64: 16, 16, 4>}, {pipeline_mode = #tpu.pipeline_mode<synchronous>, transform_indices = @transform_1, window_bounds = array<i64: 5, 4, 128>}, {pipeline_mode = #tpu.pipeline_mode<synchronous>, transform_indices = @transform_2, window_bounds = array<i64: 1, 128>}, {transform_indices = @transform_3, window_bounds = array<i64: 16, 128>}]} {
    %cst = arith.constant 0.000000e+00 : f32
    %0 = vector.broadcast %cst : f32 to vector<192x128xf32>
    %c0 = arith.constant 0 : index
    %c0_0 = arith.constant 0 : index
    %c0_1 = arith.constant 0 : index
    %1 = vector.load %arg1[%c0, %c0_0, %c0_1] : memref<16x16x4xbf16, #tpu.memory_space<vmem>>, vector<12x16x4xbf16>
    %2 = vector.shape_cast %1 : vector<12x16x4xbf16> to vector<192x4xbf16>
    %c0_2 = arith.constant 0 : index
    %c0_3 = arith.constant 0 : index
    %c0_4 = arith.constant 0 : index
    %3 = vector.load %arg2[%c0_2, %c0_3, %c0_4] : memref<5x4x128xbf16, #tpu.memory_space<vmem>>, vector<1x4x128xbf16>
    %4 = vector.shape_cast %3 : vector<1x4x128xbf16> to vector<4x128xbf16>
    %cst_5 = arith.constant dense<0.000000e+00> : vector<192x128xf32>
    %5 = tpu.matmul %2, %4, %cst_5 {dimension_numbers = #tpu.dot_dimension_numbers<[1], [0], [0], [1], [0, 0, 1, 1], [], []>} : vector<192x4xbf16>, vector<4x128xbf16>, vector<192x128xf32> -> vector<192x128xf32>
    %6 = arith.addf %0, %5 : vector<192x128xf32>
    %c1 = arith.constant 1 : index
    %c0_6 = arith.constant 0 : index
    %c0_7 = arith.constant 0 : index
    %7 = vector.load %arg1[%c1, %c0_6, %c0_7] : memref<16x16x4xbf16, #tpu.memory_space<vmem>>, vector<12x16x4xbf16>
    %8 = vector.shape_cast %7 : vector<12x16x4xbf16> to vector<192x4xbf16>
    %c1_8 = arith.constant 1 : index
    %c0_9 = arith.constant 0 : index
    %c0_10 = arith.constant 0 : index
    %9 = vector.load %arg2[%c1_8, %c0_9, %c0_10] : memref<5x4x128xbf16, #tpu.memory_space<vmem>>, vector<1x4x128xbf16>
    %10 = vector.shape_cast %9 : vector<1x4x128xbf16> to vector<4x128xbf16>
    %cst_11 = arith.constant dense<0.000000e+00> : vector<192x128xf32>
    %11 = tpu.matmul %8, %10, %cst_11 {dimension_numbers = #tpu.dot_dimension_numbers<[1], [0], [0], [1], [0, 0, 1, 1], [], []>} : vector<192x4xbf16>, vector<4x128xbf16>, vector<192x128xf32> -> vector<192x128xf32>
    %12 = arith.addf %6, %11 : vector<192x128xf32>
    %c2 = arith.constant 2 : index
    %c0_12 = arith.constant 0 : index
    %c0_13 = arith.constant 0 : index
    %13 = vector.load %arg1[%c2, %c0_12, %c0_13] : memref<16x16x4xbf16, #tpu.memory_space<vmem>>, vector<12x16x4xbf16>
    %14 = vector.shape_cast %13 : vector<12x16x4xbf16> to vector<192x4xbf16>
    %c2_14 = arith.constant 2 : index
    %c0_15 = arith.constant 0 : index
    %c0_16 = arith.constant 0 : index
    %15 = vector.load %arg2[%c2_14, %c0_15, %c0_16] : memref<5x4x128xbf16, #tpu.memory_space<vmem>>, vector<1x4x128xbf16>
    %16 = vector.shape_cast %15 : vector<1x4x128xbf16> to vector<4x128xbf16>
    %cst_17 = arith.constant dense<0.000000e+00> : vector<192x128xf32>
    %17 = tpu.matmul %14, %16, %cst_17 {dimension_numbers = #tpu.dot_dimension_numbers<[1], [0], [0], [1], [0, 0, 1, 1], [], []>} : vector<192x4xbf16>, vector<4x128xbf16>, vector<192x128xf32> -> vector<192x128xf32>
    %18 = arith.addf %12, %17 : vector<192x128xf32>
    %c3 = arith.constant 3 : index
    %c0_18 = arith.constant 0 : index
    %c0_19 = arith.constant 0 : index
    %19 = vector.load %arg1[%c3, %c0_18, %c0_19] : memref<16x16x4xbf16, #tpu.memory_space<vmem>>, vector<12x16x4xbf16>
    %20 = vector.shape_cast %19 : vector<12x16x4xbf16> to vector<192x4xbf16>
    %c3_20 = arith.constant 3 : index
    %c0_21 = arith.constant 0 : index
    %c0_22 = arith.constant 0 : index
    %21 = vector.load %arg2[%c3_20, %c0_21, %c0_22] : memref<5x4x128xbf16, #tpu.memory_space<vmem>>, vector<1x4x128xbf16>
    %22 = vector.shape_cast %21 : vector<1x4x128xbf16> to vector<4x128xbf16>
    %cst_23 = arith.constant dense<0.000000e+00> : vector<192x128xf32>
    %23 = tpu.matmul %20, %22, %cst_23 {dimension_numbers = #tpu.dot_dimension_numbers<[1], [0], [0], [1], [0, 0, 1, 1], [], []>} : vector<192x4xbf16>, vector<4x128xbf16>, vector<192x128xf32> -> vector<192x128xf32>
    %24 = arith.addf %18, %23 : vector<192x128xf32>
    %c4 = arith.constant 4 : index
    %c0_24 = arith.constant 0 : index
    %c0_25 = arith.constant 0 : index
    %25 = vector.load %arg1[%c4, %c0_24, %c0_25] : memref<16x16x4xbf16, #tpu.memory_space<vmem>>, vector<12x16x4xbf16>
    %26 = vector.shape_cast %25 : vector<12x16x4xbf16> to vector<192x4xbf16>
    %c4_26 = arith.constant 4 : index
    %c0_27 = arith.constant 0 : index
    %c0_28 = arith.constant 0 : index
    %27 = vector.load %arg2[%c4_26, %c0_27, %c0_28] : memref<5x4x128xbf16, #tpu.memory_space<vmem>>, vector<1x4x128xbf16>
    %28 = vector.shape_cast %27 : vector<1x4x128xbf16> to vector<4x128xbf16>
    %cst_29 = arith.constant dense<0.000000e+00> : vector<192x128xf32>
    %29 = tpu.matmul %26, %28, %cst_29 {dimension_numbers = #tpu.dot_dimension_numbers<[1], [0], [0], [1], [0, 0, 1, 1], [], []>} : vector<192x4xbf16>, vector<4x128xbf16>, vector<192x128xf32> -> vector<192x128xf32>
    %30 = arith.addf %24, %29 : vector<192x128xf32>
    %31 = vector.shape_cast %30 : vector<192x128xf32> to vector<12x16x128xf32>
    %cst_30 = arith.constant dense<0xFF800000> : vector<16x128xf32>
    %32 = vector.multi_reduction <maximumf>, %31, %cst_30 [0] : vector<12x16x128xf32> to vector<16x128xf32>
    %c0_31 = arith.constant 0 : index
    %c0_32 = arith.constant 0 : index
    %33 = vector.load %arg3[%c0_31, %c0_32] : memref<1x128xf32, #tpu.memory_space<vmem>>, vector<1x128xf32>
    %34 = vector.broadcast %33 : vector<1x128xf32> to vector<16x128xf32>
    %35 = arith.addf %32, %34 : vector<16x128xf32>
    %cst_33 = arith.constant 0.000000e+00 : f32
    %36 = vector.broadcast %cst_33 : f32 to vector<16x128xf32>
    %37 = arith.maximumf %35, %36 : vector<16x128xf32>
    %c0_34 = arith.constant 0 : index
    %c0_35 = arith.constant 0 : index
    %38 = vector.load %arg4[%c0_34, %c0_35] : memref<16x128xf32, #tpu.memory_space<vmem>>, vector<16x128xf32>
    tpu.vector_store %arg4[%c0_34, %c0_35], %37 {strides = array<i32>} : memref<16x128xf32, #tpu.memory_space<vmem>>, vector<16x128xf32>,
    return
  }
  func.func @transform_0(%arg0: i32) -> (i32, i32, i32) {
    %c0_i32 = arith.constant 0 : i32
    %c0_i32_0 = arith.constant 0 : i32
    %c0_i32_1 = arith.constant 0 : i32
    return %c0_i32, %arg0, %c0_i32_0 : i32, i32, i32
  }
  func.func @transform_1(%arg0: i32) -> (i32, i32, i32) {
    %c0_i32 = arith.constant 0 : i32
    %c0_i32_0 = arith.constant 0 : i32
    %c0_i32_1 = arith.constant 0 : i32
    %c0_i32_2 = arith.constant 0 : i32
    return %c0_i32, %c0_i32_0, %c0_i32_1 : i32, i32, i32
  }
  func.func @transform_2(%arg0: i32) -> (i32, i32) {
    %c0_i32 = arith.constant 0 : i32
    %c0_i32_0 = arith.constant 0 : i32
    %c0_i32_1 = arith.constant 0 : i32
    return %c0_i32, %c0_i32_0 : i32, i32
  }
  func.func @transform_3(%arg0: i32) -> (i32, i32) {
    %c0_i32 = arith.constant 0 : i32
    %c0_i32_0 = arith.constant 0 : i32
    return %arg0, %c0_i32 : i32, i32
  }
}

</mosaic_0001>

<bundles_post_ra>
// kernel: tpu_custom_call.1
= control target key start
LH: loop header
LB: loop body
LE: loop exit
PB: predicated region body
PF: predicated region fallthrough
CT: control target
= control target key end

     0   :  { %vm165_vm0 = vcmask 1041408   ;;  %vm128_vm1 = vcmask 31744   ;;  %s2362_s0 = inlined_call_operand.vmem [shape: bf16[16,16,4], index: 0, kind: input, shape index: {}]   ;;  %s2363_s1 = inlined_call_operand.vmem [shape: bf16[5,4,128], index: 1, kind: input, shape index: {}]   ;;  %s2364_s2 = inlined_call_operand.vmem [shape: f32[1,128], index: 2, kind: input, shape index: {}]   ;;  %s2365_s3 = inlined_call_operand.hbm [shape: f32[16,128], index: 3, kind: output, shape index: {}]  }
   0x1   :  { %v1438_v0 = vld [vmem:[%s2363_s1 + $0x2] sm:$0x3]  ;;  %v1841_v1 = vld [vmem:[%s2362_s0 + $0x8] sm:$0xff]   ;;  %v1842_v3 = vld [vmem:[%s2362_s0 + $0x38] sm:$0xff]  }
   0x2   :  { %1832 = vmatprep.subr.msk.bf16.mxu0 %vm165_vm0, %v1438_v0  ;;  %1833 = vmatprep.subr.msk.bf16.mxu1 %vm165_vm0, %v1438_v0  ;;  %v167_v2 = vsel %vm165_vm0, %v1438_v0, 0  ;;  %v1843_v4 = vld [vmem:[%s2362_s0 + $0x10] sm:$0xff]   ;;  %v1844_v5 = vld [vmem:[%s2362_s0 + $0x40] sm:$0xff]   ;;  %v1845_v9 = vld [vmem:[%s2362_s0 + $0x18] sm:$0xff]  }
   0x3   :  { %1701 = vmatpush3.bf16.msra.mxu0 %v167_v2  ;;  %1831 = vmatpush3.bf16.msra.mxu1 %v167_v2  ;;  %v40_v6 = vld [vmem:[%s2363_s1] sm:$0x3]  ;;  %v1511_v8 = vld [vmem:[%s2363_s1 + $0x4] sm:$0x3]  ;;  %v1846_v11 = vld [vmem:[%s2362_s0 + $0x48] sm:$0xff]  }
   0x4   :  { %1702 = vmatprep.mubr.msk.bf16.mxu0 %vm128_vm1, %v1841_v1  ;;  %1714 = vmatprep.mubr.msk.bf16.mxu1 %vm128_vm1, %v1842_v3  ;;  %v395_v7 = vsel %vm165_vm0, %v40_v6, 0  ;;  %v650_v10 = vsel %vm165_vm0, %v1511_v8, 0  ;;  %v1847_v12 = vld [vmem:[%s2362_s0 + $0x20] sm:$0xff]   ;;  %v1848_v13 = vld [vmem:[%s2362_s0 + $0x50] sm:$0xff]   ;;  %v1849_v14 = vld [vmem:[%s2362_s0 + $0x28] sm:$0xff]  }
   0x5   :  { %1834 = vmatprep.subr.msk.bf16.mxu1 %vm165_vm0, %v40_v6  ;;  %1835 = vmatprep.subr.msk.bf16.mxu0 %vm165_vm0, %v1511_v8  ;;  %v1850_v15 = vld [vmem:[%s2362_s0 + $0x58] sm:$0xff]   ;;  %v1851_v16 = vld [vmem:[%s2362_s0 + $0x30] sm:$0xff]   ;;  %v1852_v17 = vld [vmem:[%s2362_s0 + $0x60] sm:$0xff]  }
   0x6   :  { %1703 = vmatmul.mubr.msk.bf16.vlgmr.msra.gmra.mxu0 %vm128_vm1, %v1843_v4  ;;  %1715 = vmatmul.mubr.msk.bf16.vlgmr.msra.gmra.mxu1 %vm128_vm1, %v1844_v5  ;;  %v1560_v18 = vld [vmem:[%s2363_s1 + $0x6] sm:$0x3]  ;;  %v1609_v19 = vld [vmem:[%s2363_s1 + $0x8] sm:$0x3]  ;;  %v1854_v20 = vld [vmem:[%s2362_s0 + $0x10] sm:$0xff]  }
   0x7   :  { %1727 = vmatpush3.bf16.msra.mxu1 %v395_v7  ;;  %1753 = vmatpush3.bf16.msra.mxu0 %v650_v10  ;;  %v1853_v21 = vld [vmem:[%s2362_s0] sm:$0xff]   ;;  %v1856_v22 = vld [vmem:[%s2362_s0 + $0x18] sm:$0xff]   ;;  %v1855_v23 = vld [vmem:[%s2362_s0 + $0x8] sm:$0xff]   ;;  %v1208_v24 = vsel %vm165_vm0, %v1609_v19, 0  ;;  %v929_v26 = vsel %vm165_vm0, %v1560_v18, 0 }
   0x8   :  { %1706 = vmatprep.mubr.msk.bf16.mxu0 %vm128_vm1, %v1845_v9  ;;  %1718 = vmatprep.mubr.msk.bf16.mxu1 %vm128_vm1, %v1846_v11  ;;  %v1857_v25 = vld [vmem:[%s2362_s0 + $0x10] sm:$0xff]   ;;  %v1858_v27 = vld [vmem:[%s2362_s0 + $0x20] sm:$0xff]   ;;  %v1859_v28 = vld [vmem:[%s2362_s0 + $0x18] sm:$0xff]  }
   0x9   :  { %1836 = vmatprep.subr.msk.bf16.mxu1 %vm165_vm0, %v1560_v18  ;;  %1837 = vmatprep.subr.msk.bf16.mxu0 %vm165_vm0, %v1609_v19  ;;  %v1860_v29 = vld [vmem:[%s2362_s0 + $0x28] sm:$0xff]   ;;  %v1862_v30 = vld [vmem:[%s2362_s0 + $0x30] sm:$0xff]   ;;  %v1861_v31 = vld [vmem:[%s2362_s0 + $0x20] sm:$0xff]  }
   0xa   :  { %v1863_v32 = vld [vmem:[%s2362_s0 + $0x28] sm:$0xff]   ;;  %v1864_v33 = vld [vmem:[%s2362_s0 + $0x38] sm:$0xff]   ;;  %v1866_v34 = vld [vmem:[%s2362_s0 + $0x40] sm:$0xff]  }
   0xb   :  { %v1865_v35 = vld [vmem:[%s2362_s0 + $0x30] sm:$0xff]   ;;  %v1867_v36 = vld [vmem:[%s2362_s0 + $0x38] sm:$0xff]   ;;  %v1868_v37 = vld [vmem:[%s2362_s0 + $0x48] sm:$0xff]  }
   0xc   :  { %v1870_v38 = vld [vmem:[%s2362_s0 + $0x50] sm:$0xff]   ;;  %v1869_v39 = vld [vmem:[%s2362_s0 + $0x40] sm:$0xff]   ;;  %v1871_v40 = vld [vmem:[%s2362_s0 + $0x48] sm:$0xff]  }
   0xd   :  { %v1872_v41 = vld [vmem:[%s2362_s0 + $0x58] sm:$0xff]   ;;  %v1874_v42 = vld [vmem:[%s2362_s0 + $0x60] sm:$0xff]   ;;  %v1873_v43 = vld [vmem:[%s2362_s0 + $0x50] sm:$0xff]  }
   0xe   :  { %1707 = vmatmul.mubr.msk.bf16.gmra.mxu0 %vm128_vm1, %v1847_v12  ;;  %1719 = vmatmul.mubr.msk.bf16.gmra.mxu1 %vm128_vm1, %v1848_v13 }
   0xf   :  { %1710 = vmatprep.mubr.msk.bf16.mxu0 %vm128_vm1, %v1849_v14  ;;  %1722 = vmatprep.mubr.msk.bf16.mxu1 %vm128_vm1, %v1850_v15 }
  0x16   :  { %1711 = vmatmul.mubr.msk.bf16.gmra.mxu0 %vm128_vm1, %v1851_v16  ;;  %1723 = vmatmul.mubr.msk.bf16.gmra.mxu1 %vm128_vm1, %v1852_v17 }
  0x17   :  { %1754 = vmatprep.mubr.msk.bf16.mxu0 %vm128_vm1, %v1854_v20  ;;  %1728 = vmatprep.mubr.msk.bf16.mxu1 %vm128_vm1, %v1853_v21 }
  0x1e   :  { %1755 = vmatmul.mubr.msk.bf16.vlgmr.msra.gmra.mxu0 %vm128_vm1, %v1856_v22  ;;  %1729 = vmatmul.mubr.msk.bf16.vlgmr.msra.gmra.mxu1 %vm128_vm1, %v1855_v23 }
  0x1f   :  { %1805 = vmatpush3.bf16.msra.mxu0 %v1208_v24  ;;  %1779 = vmatpush3.bf16.msra.mxu1 %v929_v26 }
  0x20   :  { %1732 = vmatprep.mubr.msk.bf16.mxu1 %vm128_vm1, %v1857_v25  ;;  %1758 = vmatprep.mubr.msk.bf16.mxu0 %vm128_vm1, %v1858_v27 }
  0x26   :  { %1759 = vmatmul.mubr.msk.bf16.gmra.mxu0 %vm128_vm1, %v1860_v29  ;;  %1733 = vmatmul.mubr.msk.bf16.gmra.mxu1 %vm128_vm1, %v1859_v28 }
  0x27   :  { %1762 = vmatprep.mubr.msk.bf16.mxu0 %vm128_vm1, %v1862_v30  ;;  %1736 = vmatprep.mubr.msk.bf16.mxu1 %vm128_vm1, %v1861_v31 }
  0x2e   :  { %1763 = vmatmul.mubr.msk.bf16.gmra.mxu0 %vm128_vm1, %v1864_v33  ;;  %1737 = vmatmul.mubr.msk.bf16.gmra.mxu1 %vm128_vm1, %v1863_v32 }
  0x2f   :  { %1766 = vmatprep.mubr.msk.bf16.mxu0 %vm128_vm1, %v1866_v34  ;;  %1740 = vmatprep.mubr.msk.bf16.mxu1 %vm128_vm1, %v1865_v35 }
  0x36   :  { %1767 = vmatmul.mubr.msk.bf16.gmra.mxu0 %vm128_vm1, %v1868_v37  ;;  %1741 = vmatmul.mubr.msk.bf16.gmra.mxu1 %vm128_vm1, %v1867_v36 }
  0x37   :  { %1770 = vmatprep.mubr.msk.bf16.mxu0 %vm128_vm1, %v1870_v38  ;;  %1744 = vmatprep.mubr.msk.bf16.mxu1 %vm128_vm1, %v1869_v39 }
  0x3e   :  { %1771 = vmatmul.mubr.msk.bf16.gmra.mxu0 %vm128_vm1, %v1872_v41  ;;  %1745 = vmatmul.mubr.msk.bf16.gmra.mxu1 %vm128_vm1, %v1871_v40 }
  0x3f   :  { %1774 = vmatprep.mubr.msk.bf16.mxu0 %vm128_vm1, %v1874_v42 }
  0x40   :  { %8 = vsyncpa [#allocation3], 0  ;;  %1748 = vmatprep.mubr.msk.bf16.mxu1 %vm128_vm1, %v1873_v43  ;;  %v1876_v44 = vld [vmem:[%s2362_s0 + $0x68] sm:$0xff]   ;;  %v1875_v45 = vld [vmem:[%s2362_s0 + $0x58] sm:$0xff]   ;;  %s1923_s4 = smov [#allocation2]  }
  0x41   :  { %v1878_v46 = vld [vmem:[%s2362_s0 + $0x20] sm:$0xff]   ;;  %v1877_v47 = vld [vmem:[%s2362_s0 + $0x18] sm:$0xff]   ;;  %v1880_v48 = vld [vmem:[%s2362_s0 + $0x28] sm:$0xff]   ;;  %s1403_s5 = sshll.u32 %s1923_s4, 4  ;;  %s1404_s5 = int_to_ptr.vmem [resolvable:$true] %s1403_s5 }
  0x42   :  { %v1879_v49 = vld [vmem:[%s2362_s0 + $0x20] sm:$0xff]   ;;  %v1882_v50 = vld [vmem:[%s2362_s0 + $0x30] sm:$0xff]   ;;  %v1881_v51 = vld [vmem:[%s2362_s0 + $0x28] sm:$0xff]   ;;  %s1901_s6 = scalar_lea.vmem %s1404_s5, 256  ;;  %p1906_p1 = scmp.lt.s32.totalorder %s1404_s5, %s1404_s5 }
  0x43   :  { %v1884_v52 = vld [vmem:[%s2362_s0 + $0x38] sm:$0xff]   ;;  %v1883_v53 = vld [vmem:[%s2362_s0 + $0x30] sm:$0xff]   ;;  %v1886_v54 = vld [vmem:[%s2362_s0 + $0x40] sm:$0xff]   ;;  %p1902_p0 = scmp.ne.s32.totalorder %s1404_s5, %s1901_s6  ;;  %p1907_p2 = scmp.lt.s32.totalorder %s1901_s6, %s1901_s6 }
  0x44   :  { %v1885_v55 = vld [vmem:[%s2362_s0 + $0x38] sm:$0xff]   ;;  %v1888_v56 = vld [vmem:[%s2362_s0 + $0x48] sm:$0xff]   ;;  %v1887_v57 = vld [vmem:[%s2362_s0 + $0x40] sm:$0xff]  }
  0x45   :  { %v1890_v58 = vld [vmem:[%s2362_s0 + $0x50] sm:$0xff]   ;;  %v1889_v59 = vld [vmem:[%s2362_s0 + $0x48] sm:$0xff]   ;;  %v1892_v60 = vld [vmem:[%s2362_s0 + $0x58] sm:$0xff]   ;;  %p1908_p3 = por %p1907_p2, %p1906_p1 }
  0x46   :  { %1775 = vmatmul.mubr.msk.bf16.gmra.mxu0 %vm128_vm1, %v1876_v44  ;;  %1749 = vmatmul.mubr.msk.bf16.gmra.mxu1 %vm128_vm1, %v1875_v45  ;;  %v1891_v61 = vld [vmem:[%s2362_s0 + $0x50] sm:$0xff]   ;;  %v1894_v62 = vld [vmem:[%s2362_s0 + $0x60] sm:$0xff]   ;;  %v1893_v63 = vld [vmem:[%s2362_s0 + $0x58] sm:$0xff]  }
  0x47   :  { %1806 = vmatprep.mubr.msk.bf16.mxu0 %vm128_vm1, %v1878_v46  ;;  %1780 = vmatprep.mubr.msk.bf16.mxu1 %vm128_vm1, %v1877_v47  ;;  %v1896_v0 = vld [vmem:[%s2362_s0 + $0x68] sm:$0xff]   ;;  %v1895_v1 = vld [vmem:[%s2362_s0 + $0x60] sm:$0xff]   ;;  %v1898_v2 = vld [vmem:[%s2362_s0 + $0x70] sm:$0xff]   ;;  %p1909_p4 = pnand %p1908_p3, %p1902_p0 }
  0x48   :  { %v1897_v3 = vld [vmem:[%s2362_s0 + $0x68] sm:$0xff]   ;;  %v1900_v4 = vld [vmem:[%s2362_s0 + $0x78] sm:$0xff]   ;;  %v1899_v5 = vld [vmem:[%s2362_s0 + $0x70] sm:$0xff]  }
  0x4e   :  { %1807 = vmatmul.mubr.msk.bf16.vlgmr.msra.gmra.mxu0 %vm128_vm1, %v1880_v48  ;;  %1781 = vmatmul.mubr.msk.bf16.vlgmr.msra.gmra.mxu1 %vm128_vm1, %v1879_v49 }
  0x4f   :  { %1810 = vmatprep.mubr.msk.bf16.mxu0 %vm128_vm1, %v1882_v50  ;;  %1784 = vmatprep.mubr.msk.bf16.mxu1 %vm128_vm1, %v1881_v51 }
  0x56   :  { %1811 = vmatmul.mubr.msk.bf16.gmra.mxu0 %vm128_vm1, %v1884_v52  ;;  %1785 = vmatmul.mubr.msk.bf16.gmra.mxu1 %vm128_vm1, %v1883_v53 }
  0x57   :  { %1814 = vmatprep.mubr.msk.bf16.mxu0 %vm128_vm1, %v1886_v54  ;;  %1788 = vmatprep.mubr.msk.bf16.mxu1 %vm128_vm1, %v1885_v55 }
  0x5e   :  { %1815 = vmatmul.mubr.msk.bf16.gmra.mxu0 %vm128_vm1, %v1888_v56  ;;  %1789 = vmatmul.mubr.msk.bf16.gmra.mxu1 %vm128_vm1, %v1887_v57 }
  0x5f   :  { %1818 = vmatprep.mubr.msk.bf16.mxu0 %vm128_vm1, %v1890_v58  ;;  %1792 = vmatprep.mubr.msk.bf16.mxu1 %vm128_vm1, %v1889_v59 }
  0x66   :  { %1819 = vmatmul.mubr.msk.bf16.gmra.mxu0 %vm128_vm1, %v1892_v60  ;;  %1793 = vmatmul.mubr.msk.bf16.gmra.mxu1 %vm128_vm1, %v1891_v61 }
  0x67   :  { %1822 = vmatprep.mubr.msk.bf16.mxu0 %vm128_vm1, %v1894_v62  ;;  %1796 = vmatprep.mubr.msk.bf16.mxu1 %vm128_vm1, %v1893_v63 }
  0x6e   :  { %1823 = vmatmul.mubr.msk.bf16.gmra.mxu0 %vm128_vm1, %v1896_v0  ;;  %1797 = vmatmul.mubr.msk.bf16.gmra.mxu1 %vm128_vm1, %v1895_v1 }
  0x6f   :  { %1826 = vmatprep.mubr.msk.bf16.mxu0 %vm128_vm1, %v1898_v2  ;;  %1800 = vmatprep.mubr.msk.bf16.mxu1 %vm128_vm1, %v1897_v3 }
  0x76   :  { %1827 = vmatmul.mubr.msk.bf16.gmra.mxu0 %vm128_vm1, %v1900_v4  ;;  %1801 = vmatmul.mubr.msk.bf16.gmra.mxu1 %vm128_vm1, %v1899_v5 }
  0xc6   :  { %v1704_v6 = vpop.f32.mrf.mxu0  ;;  %v2212_v7 = vpop.f32.mrf.mxu1 }
  0xc8   :  { %v203_v8 = vpop.f32.mrf.mxu0  ;;  %v2214_v9 = vpop.f32.mrf.mxu1 }
  0xca   :  { %v1705_v10 = vpop.f32.mrf.mxu0  ;;  %v2216_v11 = vpop.f32.mrf.mxu1 }
  0xcc   :  { %v206_v12 = vpop.f32.mrf.mxu0  ;;  %v2218_v13 = vpop.f32.mrf.mxu1 }
  0xce   :  { %v1708_v14 = vpop.f32.mrf.mxu0  ;;  %v2220_v15 = vpop.f32.mrf.mxu1 }
  0xd0   :  { %v219_v16 = vpop.f32.mrf.mxu0  ;;  %v2222_v17 = vpop.f32.mrf.mxu1 }
  0xd2   :  { %v1709_v18 = vpop.f32.mrf.mxu0  ;;  %v2224_v19 = vpop.f32.mrf.mxu1 }
  0xd4   :  { %v222_v20 = vpop.f32.mrf.mxu0  ;;  %v2226_v21 = vpop.f32.mrf.mxu1 }
  0xd6   :  { %v1712_v22 = vpop.f32.mrf.mxu0  ;;  %v2228_v23 = vpop.f32.mrf.mxu1 }
  0xd8   :  { %v2230_v24 = vpop.f32.mrf.mxu0  ;;  %v2232_v25 = vpop.f32.mrf.mxu1 }
  0xd9   :  { %2366 = vst [vmem:[#allocation5_spill] sm:$0xff] %v2232_v25 }
  0xda   :  { %v1713_v26 = vpop.f32.mrf.mxu0  ;;  %v2234_v27 = vpop.f32.mrf.mxu1 }
  0xdb   :  { %2367 = vst [vmem:[#allocation6_spill] sm:$0xff] %v2234_v27 }
  0xdc   :  { %v2236_v28 = vpop.f32.mrf.mxu0  ;;  %v2238_v29 = vpop.f32.mrf.mxu1 }
  0xdd   :  { %2368 = vst [vmem:[#allocation7_spill] sm:$0xff] %v2238_v29 }
  0xde   :  { %v1756_v30 = vpop.f32.mrf.mxu0  ;;  %v1730_v31 = vpop.f32.mrf.mxu1 }
  0xdf   :  { %v440_v32 = vadd.f32 %v1730_v31, %v1704_v6 }
  0xe0   :  { %v686_v33 = vpop.f32.mrf.mxu0  ;;  %v431_v34 = vpop.f32.mrf.mxu1 }
  0xe1   :  { %v2240_v35 = vadd.f32 %v1756_v30, %v440_v32  ;;  %v432_v36 = vadd.f32 %v431_v34, %v203_v8 }
  0xe2   :  { %v1757_v37 = vpop.f32.mrf.mxu0  ;;  %v1731_v38 = vpop.f32.mrf.mxu1 }
  0xe3   :  { %v2242_v39 = vadd.f32 %v686_v33, %v432_v36  ;;  %v443_v40 = vadd.f32 %v1731_v38, %v1705_v10 }
  0xe4   :  { %v689_v41 = vpop.f32.mrf.mxu0  ;;  %v434_v42 = vpop.f32.mrf.mxu1 }
  0xe5   :  { %v2244_v43 = vadd.f32 %v1757_v37, %v443_v40  ;;  %v435_v44 = vadd.f32 %v434_v42, %v206_v12 }
  0xe6   :  { %v1760_v45 = vpop.f32.mrf.mxu0  ;;  %v1734_v46 = vpop.f32.mrf.mxu1 }
  0xe7   :  { %v2246_v47 = vadd.f32 %v689_v41, %v435_v44  ;;  %v456_v48 = vadd.f32 %v1734_v46, %v1708_v14 }
  0xe8   :  { %v702_v49 = vpop.f32.mrf.mxu0  ;;  %v447_v50 = vpop.f32.mrf.mxu1 }
  0xe9   :  { %v787_v51 = vadd.f32 %v1760_v45, %v456_v48  ;;  %v448_v52 = vadd.f32 %v447_v50, %v219_v16 }
  0xea   :  { %v1761_v53 = vpop.f32.mrf.mxu0  ;;  %v1735_v54 = vpop.f32.mrf.mxu1 }
  0xeb   :  { %v785_v55 = vadd.f32 %v702_v49, %v448_v52  ;;  %v459_v56 = vadd.f32 %v1735_v54, %v1709_v18 }
  0xec   :  { %v705_v57 = vpop.f32.mrf.mxu0  ;;  %v450_v58 = vpop.f32.mrf.mxu1 }
  0xed   :  { %v2248_v59 = vadd.f32 %v1761_v53, %v459_v56  ;;  %v451_v60 = vadd.f32 %v450_v58, %v222_v20 }
  0xee   :  { %v1764_v61 = vpop.f32.mrf.mxu0  ;;  %v1738_v62 = vpop.f32.mrf.mxu1 }
  0xef   :  { %v2250_v63 = vadd.f32 %v705_v57, %v451_v60  ;;  %v472_v0 = vadd.f32 %v1738_v62, %v1712_v22 }
  0xf0   :  { %v2252_v1 = vpop.f32.mrf.mxu0  ;;  %v463_v2 = vpop.f32.mrf.mxu1 }
  0xf1   :  { %v2254_v3 = vadd.f32 %v1764_v61, %v472_v0 }
  0xf2   :  { %v1765_v4 = vpop.f32.mrf.mxu0  ;;  %v1739_v5 = vpop.f32.mrf.mxu1 }
  0xf3   :  { %v475_v6 = vadd.f32 %v1739_v5, %v1713_v26 }
  0xf4   :  { %v2256_v8 = vpop.f32.mrf.mxu0  ;;  %v466_v10 = vpop.f32.mrf.mxu1 }
  0xf5   :  { %v2258_v12 = vadd.f32 %v1765_v4, %v475_v6 }
  0xf6   :  { %v2260_v14 = vpop.f32.mrf.mxu0  ;;  %v2262_v16 = vpop.f32.mrf.mxu1 }
  0xf8   :  { %v2264_v18 = vpop.f32.mrf.mxu0  ;;  %v2266_v20 = vpop.f32.mrf.mxu1 }
  0xfa   :  { %v2268_v22 = vpop.f32.mrf.mxu0  ;;  %v2270_v30 = vpop.f32.mrf.mxu1 }
  0xfc   :  { %v2272_v31 = vpop.f32.mrf.mxu0  ;;  %v2274_v26 = vpop.f32.mrf.mxu1 }
  0xfe   :  { %v2276_v32 = vpop.f32.mrf.mxu0  ;;  %v2278_v33 = vpop.f32.mrf.mxu1 }
 0x100   :  { %v2280_v34 = vpop.f32.mrf.mxu0  ;;  %v2282_v36 = vpop.f32.mrf.mxu1 }
 0x102   :  { %v2284_v37 = vpop.f32.mrf.mxu0  ;;  %v2286_v38 = vpop.f32.mrf.mxu1 }
 0x103   :  { %2369 = vst [vmem:[#allocation8_spill] sm:$0xff] %v2284_v37 }
 0x104   :  { %v2288_v40 = vpop.f32.mrf.mxu0  ;;  %v2290_v41 = vpop.f32.mrf.mxu1 }
 0x105   :  { %2370 = vst [vmem:[#allocation9_spill] sm:$0xff] %v2288_v40  ;;  %v464_v40 = vadd.f32 %v463_v2, %v2230_v24  ;;  %v467_v24 = vadd.f32 %v466_v10, %v2236_v28 }
 0x106   :  { %v2292_v42 = vpop.f32.mrf.mxu0  ;;  %v2294_v44 = vpop.f32.mrf.mxu1 }
 0x107   :  { %2371 = vst [vmem:[#allocation10_spill] sm:$0xff] %v2292_v42  ;;  %2372 = vst [vmem:[#allocation11_spill] sm:$0xff] %v2294_v44  ;;  %v790_v28 = vadd.f32 %v2256_v8, %v467_v24  ;;  %v483_v8 = vadd.f32 %v2274_v26, %v2218_v13 }
 0x108   :  { %v2296_v45 = vpop.f32.mrf.mxu0  ;;  %v2298_v46 = vpop.f32.mrf.mxu1 }
 0x109   :  { %2373 = vst [vmem:[#allocation12_spill] sm:$0xff] %v2296_v45  ;;  %2374 = vst [vmem:[#allocation13_spill] sm:$0xff] %v2298_v46  ;;  %v794_v13 = vadd.f32 %v2272_v31, %v483_v8  ;;  %v499_v31 = vadd.f32 %v2290_v41, %v2226_v21 }
 0x10a   :  { %v2300_v48 = vpop.f32.mrf.mxu0  ;;  %v2302_v49 = vpop.f32.mrf.mxu1 }
 0x10b   :  { %2375 = vst [vmem:[#allocation14_spill] sm:$0xff] %v2300_v48  ;;  %2376 = vst [vmem:[#allocation15_spill] sm:$0xff] %v2302_v49 }
 0x10c   :  { %v2304_v50 = vpop.f32.mrf.mxu0  ;;  %v2306_v52 = vpop.f32.mrf.mxu1 }
 0x10d   :  { %2377 = vst [vmem:[#allocation16_spill] sm:$0xff] %v2304_v50  ;;  %2378 = vst [vmem:[#allocation17_spill] sm:$0xff] %v2306_v52 }
 0x10e   :  { %v1808_v53 = vpop.f32.mrf.mxu0  ;;  %v1782_v54 = vpop.f32.mrf.mxu1 }
 0x10f   :  { %v1062_v0 = vadd.f32 %v1782_v54, %v2240_v35 }
 0x110   :  { %v1244_v56 = vpop.f32.mrf.mxu0  ;;  %v965_v57 = vpop.f32.mrf.mxu1 }
 0x111   :  { %v1060_v5 = vadd.f32 %v965_v57, %v2242_v39  ;;  %v1341_v50 = vadd.f32 %v1808_v53, %v1062_v0 }
 0x112   :  { %v1809_v58 = vpop.f32.mrf.mxu0  ;;  %v1783_v60 = vpop.f32.mrf.mxu1 }
 0x113   :  { %v1063_v52 = vadd.f32 %v1783_v60, %v2244_v43  ;;  %v1339_v46 = vadd.f32 %v1244_v56, %v1060_v5 }
 0x114   :  { %v1247_v61 = vpop.f32.mrf.mxu0  ;;  %v968_v62 = vpop.f32.mrf.mxu1 }
 0x115   :  { %v1061_v37 = vadd.f32 %v968_v62, %v2246_v47 }
 0x116   :  { %v1812_v4 = vpop.f32.mrf.mxu0  ;;  %v1786_v6 = vpop.f32.mrf.mxu1 }
 0x117   :  { %v1066_v48 = vadd.f32 %v1786_v6, %v787_v51  ;;  %v1342_v6 = vadd.f32 %v1809_v58, %v1063_v52 }
 0x118   :  { %v1260_v29 = vpop.f32.mrf.mxu0  ;;  %v981_v45 = vpop.f32.mrf.mxu1 }
 0x119   :  { %v1345_v49 = vadd.f32 %v1812_v4, %v1066_v48  ;;  %v1064_v27 = vadd.f32 %v981_v45, %v785_v55  ;;  %v789_v55 = vadd.f32 %v2252_v1, %v464_v40  ;;  %v1340_v45 = vadd.f32 %v1247_v61, %v1061_v37 }
 0x11a   :  { %v1813_v42 = vpop.f32.mrf.mxu0  ;;  %v1787_v25 = vpop.f32.mrf.mxu1  ;;  %v480_v1 = vadd.f32 %v2266_v20, %v2214_v9 }
 0x11b   :  { %v1364_v35 = vmax.f32 %v1341_v50, %v1345_v49  ;;  %v1343_v54 = vadd.f32 %v1260_v29, %v1064_v27  ;;  %v1067_v39 = vadd.f32 %v1787_v25, %v2248_v59  ;;  %v488_v25 = vadd.f32 %v2262_v16, %v2212_v7 }
 0x11c   :  { %v1263_v57 = vpop.f32.mrf.mxu0  ;;  %v984_v51 = vpop.f32.mrf.mxu1  ;;  %v491_v7 = vadd.f32 %v2270_v30, %v2216_v11  ;;  %v793_v9 = vadd.f32 %v2264_v18, %v480_v1  ;;  %v496_v18 = vadd.f32 %v2282_v36, %v2222_v17 }
 0x11d   :  { %v1363_v44 = vmax.f32 %v1339_v46, %v1343_v54  ;;  %v1346_v53 = vadd.f32 %v1813_v42, %v1067_v39  ;;  %v1065_v43 = vadd.f32 %v984_v51, %v2250_v63  ;;  %v795_v52 = vadd.f32 %v2260_v14, %v488_v25  ;;  %v2380_v25 = vld [vmem:[#allocation8_spill] sm:$0xff] }
 0x11e   :  { %v1816_v48 = vpop.f32.mrf.mxu0  ;;  %v1790_v2 = vpop.f32.mrf.mxu1  ;;  %v504_v14 = vadd.f32 %v2278_v33, %v2220_v15  ;;  %v796_v11 = vadd.f32 %v2268_v22, %v491_v7  ;;  %v507_v22 = vadd.f32 %v2286_v38, %v2224_v19 }
 0x11f   :  { %v1375_v56 = vmax.f32 %v1342_v6, %v1346_v53  ;;  %v1344_v47 = vadd.f32 %v1263_v57, %v1065_v43  ;;  %v1070_v27 = vadd.f32 %v1790_v2, %v2254_v3  ;;  %v797_v2 = vadd.f32 %v2280_v34, %v496_v18  ;;  %v2382_v34 = vld [vmem:[#allocation13_spill] sm:$0xff] }
 0x120   :  { %v1276_v29 = vpop.f32.mrf.mxu0  ;;  %v997_v59 = vpop.f32.mrf.mxu1  ;;  %v799_v43 = vadd.f32 %v2276_v32, %v504_v14  ;;  %v2379_v32 = vld [vmem:[#allocation11_spill] sm:$0xff]  ;;  %v800_v19 = vadd.f32 %v2380_v25, %v507_v22 }
 0x121   :  { %v1374_v46 = vmax.f32 %v1340_v45, %v1344_v47  ;;  %v1349_v42 = vadd.f32 %v1816_v48, %v1070_v27  ;;  %v1068_v49 = vadd.f32 %v997_v59, %v789_v55  ;;  %v520_v27 = vadd.f32 %v2379_v32, %v2228_v23 }
 0x122   :  { %v1817_v63 = vpop.f32.mrf.mxu0  ;;  %v1791_v40 = vpop.f32.mrf.mxu1 }
 0x123   :  { %v1366_v10 = vmax.f32 %v1364_v35, %v1349_v42  ;;  %v1347_v37 = vadd.f32 %v1276_v29, %v1068_v49  ;;  %v1071_v50 = vadd.f32 %v1791_v40, %v2258_v12  ;;  %v2381_v49 = vld [vmem:[#allocation5_spill] sm:$0xff] }
 0x124   :  { %v1279_v3 = vpop.f32.mrf.mxu0  ;;  %v1000_v58 = vpop.f32.mrf.mxu1  ;;  %v2383_v40 = vld [vmem:[#allocation9_spill] sm:$0xff] }
 0x125   :  { %v1365_v16 = vmax.f32 %v1363_v44, %v1347_v37  ;;  %v1350_v60 = vadd.f32 %v1817_v63, %v1071_v50  ;;  %v1069_v61 = vadd.f32 %v1000_v58, %v790_v28  ;;  %v512_v63 = vadd.f32 %v2382_v34, %v2381_v49  ;;  %v2384_v50 = vld [vmem:[#allocation10_spill] sm:$0xff]  ;;  %v2386_v58 = vld [vmem:[#allocation15_spill] sm:$0xff] }
 0x126   :  { %v1820_v62 = vpop.f32.mrf.mxu0  ;;  %v1794_v20 = vpop.f32.mrf.mxu1  ;;  %v798_v21 = vadd.f32 %v2383_v40, %v499_v31 }
 0x127   :  { %v1377_v0 = vmax.f32 %v1375_v56, %v1350_v60  ;;  %v1348_v4 = vadd.f32 %v1279_v3, %v1069_v61  ;;  %v1074_v12 = vadd.f32 %v1794_v20, %v795_v52  ;;  %v803_v3 = vadd.f32 %v2384_v50, %v520_v27  ;;  %v2385_v52 = vld [vmem:[#allocation6_spill] sm:$0xff] }
 0x128   :  { %v1292_v5 = vpop.f32.mrf.mxu0  ;;  %v1013_v35 = vpop.f32.mrf.mxu1  ;;  %v523_v7 = vadd.f32 %v2386_v58, %v2385_v52 }
 0x129   :  { %v1376_v30 = vmax.f32 %v1374_v46, %v1348_v4  ;;  %v1353_v44 = vadd.f32 %v1820_v62, %v1074_v12  ;;  %v1072_v54 = vadd.f32 %v1013_v35, %v793_v9  ;;  %v2387_v9 = vld [vmem:[#allocation12_spill] sm:$0xff]  ;;  %v2389_v4 = vld [vmem:[#allocation17_spill] sm:$0xff] }
 0x12a   :  { %v1821_v39 = vpop.f32.mrf.mxu0  ;;  %v1795_v57 = vpop.f32.mrf.mxu1  ;;  %v801_v20 = vadd.f32 %v2387_v9, %v512_v63 }
 0x12b   :  { %v1368_v26 = vmax.f32 %v1366_v10, %v1353_v44  ;;  %v1351_v51 = vadd.f32 %v1292_v5, %v1072_v54  ;;  %v1075_v6 = vadd.f32 %v1795_v57, %v796_v11  ;;  %v2390_v44 = vld [vmem:[#allocation14_spill] sm:$0xff] }
 0x12c   :  { %v1295_v53 = vpop.f32.mrf.mxu0  ;;  %v1016_v15 = vpop.f32.mrf.mxu1  ;;  %v804_v54 = vadd.f32 %v2390_v44, %v523_v7 }
 0x12d   :  { %v1367_v33 = vmax.f32 %v1365_v16, %v1351_v51  ;;  %v1354_v48 = vadd.f32 %v1821_v39, %v1075_v6  ;;  %v1073_v55 = vadd.f32 %v1016_v15, %v794_v13  ;;  %v2391_v51 = vld [vmem:[#allocation16_spill] sm:$0xff] }
 0x12e   :  { %v1824_v24 = vpop.f32.mrf.mxu0  ;;  %v1798_v17 = vpop.f32.mrf.mxu1 }
 0x12f   :  { %v1379_v36 = vmax.f32 %v1377_v0, %v1354_v48  ;;  %v1352_v45 = vadd.f32 %v1295_v53, %v1073_v55  ;;  %v1078_v56 = vadd.f32 %v1798_v17, %v799_v43  ;;  %v2388_v0 = vld [vmem:[#allocation7_spill] sm:$0xff] }
 0x130   :  { %v1308_v47 = vpop.f32.mrf.mxu0  ;;  %v1029_v29 = vpop.f32.mrf.mxu1  ;;  %v515_v12 = vadd.f32 %v2389_v4, %v2388_v0 }
 0x131   :  { %v1378_v38 = vmax.f32 %v1376_v30, %v1352_v45  ;;  %v1357_v59 = vadd.f32 %v1824_v24, %v1078_v56  ;;  %v1076_v46 = vadd.f32 %v1029_v29, %v797_v2  ;;  %v1634_v24 = vld [vmem:[%s2364_s2] ss:$0 sm:$0xff] }
 0x132   :  { %v1825_v42 = vpop.f32.mrf.mxu0  ;;  %v1799_v1 = vpop.f32.mrf.mxu1  ;;  %v802_v6 = vadd.f32 %v2391_v51, %v515_v12 }
 0x133   :  { %v1370_v41 = vmax.f32 %v1368_v26, %v1357_v59  ;;  %v1355_v28 = vadd.f32 %v1308_v47, %v1076_v46  ;;  %v1079_v10 = vadd.f32 %v1799_v1, %v800_v19 }
 0x134   :  { %v1311_v37 = vpop.f32.mrf.mxu0  ;;  %v1032_v23 = vpop.f32.mrf.mxu1 }
 0x135   :  { %v1369_v16 = vmax.f32 %v1367_v33, %v1355_v28  ;;  %v1358_v60 = vadd.f32 %v1825_v42, %v1079_v10  ;;  %v1077_v61 = vadd.f32 %v1032_v23, %v798_v21 }
 0x136   :  { %v1828_v62 = vpop.f32.mrf.mxu0  ;;  %v1802_v8 = vpop.f32.mrf.mxu1 }
 0x137   :  { %v1381_v5 = vmax.f32 %v1379_v36, %v1358_v60  ;;  %v1356_v14 = vadd.f32 %v1311_v37, %v1077_v61  ;;  %v1082_v35 = vadd.f32 %v1802_v8, %v803_v3 }
 0x138   :  { %v1324_v11 = vpop.f32.mrf.mxu0  ;;  %v1045_v30 = vpop.f32.mrf.mxu1 }
 0x139   :  { %v1380_v39 = vmax.f32 %v1378_v38, %v1356_v14  ;;  %v1361_v18 = vadd.f32 %v1828_v62, %v1082_v35  ;;  %v1080_v57 = vadd.f32 %v1045_v30, %v801_v20 }
 0x13a   :  { %v1803_v13 = vpop.f32.mrf.mxu1  ;;  %v1829_v26 = vpop.f32.mrf.mxu0 }
 0x13b   :  { %v1372_v53 = vmax.f32 %v1370_v41, %v1361_v18  ;;  %v1359_v43 = vadd.f32 %v1324_v11, %v1080_v57  ;;  %v1083_v15 = vadd.f32 %v1803_v13, %v804_v54 }
 0x13c   :  { %v1048_v22 = vpop.f32.mrf.mxu1  ;;  %v1327_v2 = vpop.f32.mrf.mxu0 }
 0x13d   :  { %v1371_v33 = vmax.f32 %v1369_v16, %v1359_v43  ;;  %v1362_v48 = vadd.f32 %v1829_v26, %v1083_v15  ;;  %v1081_v55 = vadd.f32 %v1048_v22, %v802_v6 }
 0x13f   :  { %v1373_v17 = vmax.f32 %v1371_v33, %v1372_v53  ;;  %v1383_v31 = vmax.f32 %v1381_v5, %v1362_v48  ;;  %v1360_v36 = vadd.f32 %v1327_v2, %v1081_v55 }
 0x141   :  { %v1392_v45 = vadd.f32 %v1634_v24, %v1373_v17  ;;  %v1382_v56 = vmax.f32 %v1380_v39, %v1360_v36 }
 0x143   :  { %v1394_v47 = vmax.f32 %v1392_v45, 0.0  ;;  %v1384_v32 = vmax.f32 %v1382_v56, %v1383_v31 }
 0x145   :  { %1396 = vst [vmem:[#allocation2] sm:$0xff] %v1394_v47  ;;  %v1393_v27 = vadd.f32 %v1634_v24, %v1384_v32 }
 0x147   :  { %v1395_v29 = vmax.f32 %v1393_v27, 0.0 }
 0x149   :  { %1397 = vst [vmem:[#allocation2 + $0x8] sm:$0xff] %v1395_v29 }
 0x14a   :  { %1912 = shalt.err (!%p1909_p4)
}
 0x14b   :  { %s1924_s2 = smov 128   ;;  %s1925_s7 = smov 8  }
 0x14c   :  { %1409 = dma.vmem_to_hbm [thread:$0]  %s1404_s5, 256, %s2365_s3, [#allocation3], %s1924_s2, %s1924_s2, %s1925_s7  }
 0x14d   :  { %1921 = dma.done.wait [#allocation3], 256  }
 0x14e   :  { %1922 = vsyncadd [#allocation3], 4294967040 }
 0x14f   :  { %1413 = vsyncpa [#allocation3], 1 }

</bundles_post_ra>
